<compile_context>
chip_gen: v7x
topology: tpu7x:2x2x1
jax: 0.10.0
libtpu: 0.0.40
codegen_flags: <defaults>
</compile_context>

<pallas_src>
import math

import jax
import jax.numpy as jnp
import numpy as np
from jax.experimental import pallas as pl
from jax.experimental.pallas import tpu as pltpu


# --------------------------------------------------------------------------- #
# Kernel 1: fused QKV projection
# --------------------------------------------------------------------------- #
def qkv_proj_kernel(x_ref, wqkv_ref, bqkv_ref, out_ref):
    # (tq, D) @ (D, 3D) -> (tq, 3D), f32 accumulation on the MXU.
    out_ref[0] = (
        jnp.dot(x_ref[0], wqkv_ref[...], preferred_element_type=jnp.float32)
        + bqkv_ref[...]
    ).astype(out_ref.dtype)


# --------------------------------------------------------------------------- #
# Kernel 2: attention (online softmax) + out-proj + LN1 + FFN + LN2
# --------------------------------------------------------------------------- #
def attn_ffn_kernel(x_ref, q_ref, k_ref, v_ref,
                    wo_ref, bo_ref, g1_ref, be1_ref,
                    w1_ref, b1_ref, w2_ref, b2_ref, g2_ref, be2_ref,
                    out_ref, m_ref, l_ref, acc_ref):
    eps = 1e-12
    kv_idx = pl.program_id(2)
    n_kv = pl.num_programs(2)
    n_head = q_ref.shape[1]

    @pl.when(kv_idx == 0)
    def _():
        m_ref[...] = jnp.full(m_ref.shape, -jnp.inf, m_ref.dtype)
        l_ref[...] = jnp.zeros(l_ref.shape, l_ref.dtype)
        acc_ref[...] = jnp.zeros(acc_ref.shape, acc_ref.dtype)

    qh = q_ref[0]                                   # (H, tq, dh), scale pre-folded
    kh = k_ref[0]                                   # (H, tk, dh)
    vh = v_ref[0]                                   # (H, tk, dh)

    # Batched per-head scores (no per-head slicing / relayout).
    s = jnp.einsum("hqd,hkd->hqk", qh, kh,
                   preferred_element_type=jnp.float32)        # (H, tq, tk)

    # Online softmax update.
    m_prev = m_ref[...]
    m_new = jnp.maximum(m_prev, jnp.max(s, axis=-1, keepdims=True))
    alpha = jnp.exp(m_prev - m_new)
    p = jnp.exp(s - m_new)
    l_ref[...] = alpha * l_ref[...] + jnp.sum(p, axis=-1, keepdims=True)
    acc_ref[...] = alpha * acc_ref[...] + jnp.einsum(
        "hqk,hkd->hqd", p.astype(vh.dtype), vh,
        preferred_element_type=jnp.float32)                   # (H, tq, dh)
    m_ref[...] = m_new

    @pl.when(kv_idx == n_kv - 1)
    def _():
        # Exact softmax normalization (runs once per query tile; cheap).
        o = acc_ref[...] / l_ref[...]                          # (H, tq, dh)

        # Output projection accumulated per head -> no concat / lane relayout.
        attn = jnp.dot(o[0], wo_ref[0], preferred_element_type=jnp.float32)
        for h in range(1, n_head):
            attn = attn + jnp.dot(o[h], wo_ref[h],
                                  preferred_element_type=jnp.float32)
        attn = attn + bo_ref[...]                                   # (tq, D)

        x = x_ref[0].astype(jnp.float32)

        # Residual + LayerNorm 1 (dropout = identity).
        y = x + attn
        mu = jnp.mean(y, axis=-1, keepdims=True)
        yc = y - mu
        var = jnp.mean(yc * yc, axis=-1, keepdims=True)
        y = yc * jax.lax.rsqrt(var + eps)
        y = y * g1_ref[...] + be1_ref[...]

        # Position-wise FFN.
        h1 = jnp.dot(y.astype(w1_ref.dtype), w1_ref[...],
                     preferred_element_type=jnp.float32) + b1_ref[...]
        h1 = jnp.maximum(h1, 0.0)
        f = jnp.dot(h1.astype(w2_ref.dtype), w2_ref[...],
                    preferred_element_type=jnp.float32) + b2_ref[...]

        # Residual + LayerNorm 2.
        z = y + f
        mu2 = jnp.mean(z, axis=-1, keepdims=True)
        zc = z - mu2
        var2 = jnp.mean(zc * zc, axis=-1, keepdims=True)
        z = zc * jax.lax.rsqrt(var2 + eps)
        z = z * g2_ref[...] + be2_ref[...]

        out_ref[0] = z.astype(out_ref.dtype)


# --------------------------------------------------------------------------- #
# Wrapper
# --------------------------------------------------------------------------- #
def encoder_layer(x, params, n_head, *, q_block=None, kv_block=None):
    B, S, D = x.shape
    assert D % n_head == 0, "d_model must be divisible by n_head"
    dh = D // n_head
    ffn_hidden = params["w1"].shape[1]

    # Sequence tiles (flash-style).  For real model sizes pick multiples of 128.
    tq = S if q_block is None else min(q_block, S)
    tk = S if kv_block is None else min(kv_block, S)
    assert S % tq == 0 and S % tk == 0

    # Fused QKV weight/bias with the softmax scale folded into the Q portion.
    scale = 1.0 / math.sqrt(dh)
    wqkv = jnp.concatenate(
        [params["wq"] * scale, params["wk"], params["wv"]], axis=1)   # (D, 3D)
    bqkv = jnp.concatenate(
        [params["bq"] * scale, params["bk"], params["bv"]], axis=1)   # (1, 3D)
    wo_h = params["wo"].reshape(n_head, dh, D)                        # per-head slabs

    vmem_limit = 64 * 1024 * 1024

    # ---- Kernel 1: fused QKV projection ----
    qkv = pl.pallas_call(
        qkv_proj_kernel,
        out_shape=jax.ShapeDtypeStruct((B, S, 3 * D), x.dtype),
        grid_spec=pltpu.PrefetchScalarGridSpec(
            num_scalar_prefetch=0,
            grid=(B, S // tq),
            in_specs=[
                pl.BlockSpec((1, tq, D), lambda b, r: (b, r, 0)),
                pl.BlockSpec((D, 3 * D), lambda b, r: (0, 0)),
                pl.BlockSpec((1, 3 * D), lambda b, r: (0, 0)),
            ],
            out_specs=pl.BlockSpec((1, tq, 3 * D), lambda b, r: (b, r, 0)),
        ),
        compiler_params=pltpu.CompilerParams(
            dimension_semantics=("parallel", "parallel"),
            vmem_limit_bytes=vmem_limit),
    )(x, wqkv, bqkv)

    # Host-side layout plumbing: split q/k/v and go head-major (B, H, S, dh).
    q, k, v = jnp.split(qkv, 3, axis=-1)
    to_heads = lambda t: t.reshape(B, S, n_head, dh).transpose(0, 2, 1, 3)
    qh, kh, vh = to_heads(q), to_heads(k), to_heads(v)

    def full2(shape):
        return pl.BlockSpec(shape, lambda b, i, j: (0, 0))

    in_specs = [
        pl.BlockSpec((1, tq, D), lambda b, i, j: (b, i, 0)),                # x (residual)
        pl.BlockSpec((1, n_head, tq, dh), lambda b, i, j: (b, 0, i, 0)),    # q heads
        pl.BlockSpec((1, n_head, tk, dh), lambda b, i, j: (b, 0, j, 0)),    # k heads
        pl.BlockSpec((1, n_head, tk, dh), lambda b, i, j: (b, 0, j, 0)),    # v heads
        pl.BlockSpec((n_head, dh, D), lambda b, i, j: (0, 0, 0)),           # wo (per head)
        full2((1, D)),                                                      # bo
        full2((1, D)), full2((1, D)),                                       # gamma1, beta1
        full2((D, ffn_hidden)), full2((1, ffn_hidden)),                     # w1, b1
        full2((ffn_hidden, D)), full2((1, D)),                              # w2, b2
        full2((1, D)), full2((1, D)),                                       # gamma2, beta2
    ]
    # TODO(synk): for real model sizes on v7x (64 MiB VMEM), single-buffer the constant
    # weight BlockSpecs and/or stream w1/w2 from HBM; use bf16 weights where possible.

    # ---- Kernel 2: attention + out-proj + LN1 + FFN + LN2 ----
    out = pl.pallas_call(
        attn_ffn_kernel,
        out_shape=jax.ShapeDtypeStruct((B, S, D), x.dtype),
        grid_spec=pltpu.PrefetchScalarGridSpec(
            num_scalar_prefetch=0,
            grid=(B, S // tq, S // tk),
            in_specs=in_specs,
            out_specs=pl.BlockSpec((1, tq, D), lambda b, i, j: (b, i, 0)),
            scratch_shapes=[
                pltpu.VMEM((n_head, tq, 1), jnp.float32),    # running max  m
                pltpu.VMEM((n_head, tq, 1), jnp.float32),    # running sum  l
                pltpu.VMEM((n_head, tq, dh), jnp.float32),   # attention accumulator
            ],
        ),
        compiler_params=pltpu.CompilerParams(
            dimension_semantics=("parallel", "parallel", "arbitrary"),
            vmem_limit_bytes=vmem_limit),
    )(x, qh, kh, vh, wo_h, params["bo"], params["g1"], params["be1"],
      params["w1"], params["b1"], params["w2"], params["b2"],
      params["g2"], params["be2"])

    return out


# --------------------------------------------------------------------------- #
# Pure-JAX reference + test
# --------------------------------------------------------------------------- #
def encoder_layer_ref(x, params, n_head):
    B, S, D = x.shape
    dh = D // n_head
    eps = 1e-12

    q = x @ params["wq"] + params["bq"]
    k = x @ params["wk"] + params["bk"]
    v = x @ params["wv"] + params["bv"]

    def split(t):
        return t.reshape(B, S, n_head, dh).transpose(0, 2, 1, 3)

    qh, kh, vh = split(q), split(k), split(v)
    s = jnp.einsum("bhqd,bhkd->bhqk", qh, kh) / math.sqrt(dh)
    p = jax.nn.softmax(s, axis=-1)
    o = jnp.einsum("bhqk,bhkd->bhqd", p, vh)
    o = o.transpose(0, 2, 1, 3).reshape(B, S, D)
    attn = o @ params["wo"] + params["bo"]

    def ln(t, g, b):
        m = jnp.mean(t, axis=-1, keepdims=True)
        var = jnp.mean((t - m) ** 2, axis=-1, keepdims=True)
        return (t - m) / jnp.sqrt(var + eps) * g + b

    y = ln(x + attn, params["g1"], params["be1"])
    f = jnp.maximum(y @ params["w1"] + params["b1"], 0.0) @ params["w2"] + params["b2"]
    return ln(y + f, params["g2"], params["be2"])


def make_params(key, d_model, ffn_hidden):
    keys = jax.random.split(key, 12)
    s = 1.0 / math.sqrt(d_model)
    sh = 1.0 / math.sqrt(ffn_hidden)
    return {
        "wq": jax.random.normal(keys[0], (d_model, d_model), jnp.float32) * s,
        "bq": jax.random.normal(keys[1], (1, d_model), jnp.float32) * 0.01,
        "wk": jax.random.normal(keys[2], (d_model, d_model), jnp.float32) * s,
        "bk": jax.random.normal(keys[3], (1, d_model), jnp.float32) * 0.01,
        "wv": jax.random.normal(keys[4], (d_model, d_model), jnp.float32) * s,
        "bv": jax.random.normal(keys[5], (1, d_model), jnp.float32) * 0.01,
        "wo": jax.random.normal(keys[6], (d_model, d_model), jnp.float32) * s,
        "bo": jax.random.normal(keys[7], (1, d_model), jnp.float32) * 0.01,
        "g1": jnp.ones((1, d_model), jnp.float32),
        "be1": jnp.zeros((1, d_model), jnp.float32),
        "w1": jax.random.normal(keys[8], (d_model, ffn_hidden), jnp.float32) * s,
        "b1": jax.random.normal(keys[9], (1, ffn_hidden), jnp.float32) * 0.01,
        "w2": jax.random.normal(keys[10], (ffn_hidden, d_model), jnp.float32) * sh,
        "b2": jax.random.normal(keys[11], (1, d_model), jnp.float32) * 0.01,
        "g2": jnp.ones((1, d_model), jnp.float32),
        "be2": jnp.zeros((1, d_model), jnp.float32),
    }


if __name__ == "__main__":
    # Small but lane-dense shapes (D multiple of 128).
    batch, seq, d_model, ffn_hidden, n_head = 2, 8, 128, 256, 4

    key = jax.random.PRNGKey(0)
    kx, kp = jax.random.split(key)
    x = jax.random.normal(kx, (batch, seq, d_model), jnp.float32)
    params = make_params(kp, d_model, ffn_hidden)

    out = jax.block_until_ready(encoder_layer(x, params, n_head))

    ref = encoder_layer_ref(x, params, n_head)
    np.testing.assert_allclose(np.asarray(out), np.asarray(ref), rtol=2e-3, atol=2e-3)

    print("KERNEL_OK")
</pallas_src>

<mosaic_0001>
module attributes {stable_mosaic.version = 11 : i64} {
  func.func @qkv_proj_kernel(%arg0: i32, %arg1: i32, %arg2: memref<1x8x128xf32, #tpu.memory_space<vmem>>, %arg3: memref<128x384xf32, #tpu.memory_space<vmem>>, %arg4: memref<1x384xf32, #tpu.memory_space<vmem>>, %arg5: memref<1x8x384xf32, #tpu.memory_space<vmem>>) attributes {dimension_semantics = [#tpu.dimension_semantics<parallel>, #tpu.dimension_semantics<parallel>], iteration_bounds = array<i64: 2, 1>, scalar_prefetch = 0 : i64, scratch_operands = 0 : i64, tpu.core_type = #tpu.core_type<tc>, window_params = [{transform_indices = @transform_0, window_bounds = array<i64: 1, 8, 128>}, {pipeline_mode = #tpu.pipeline_mode<synchronous>, transform_indices = @transform_1, window_bounds = array<i64: 128, 384>}, {pipeline_mode = #tpu.pipeline_mode<synchronous>, transform_indices = @transform_2, window_bounds = array<i64: 1, 384>}, {transform_indices = @transform_3, window_bounds = array<i64: 1, 8, 384>}]} {
    %c0 = arith.constant 0 : index
    %c0_0 = arith.constant 0 : index
    %c0_1 = arith.constant 0 : index
    %0 = vector.load %arg2[%c0, %c0_0, %c0_1] : memref<1x8x128xf32, #tpu.memory_space<vmem>>, vector<1x8x128xf32>
    %1 = vector.shape_cast %0 : vector<1x8x128xf32> to vector<8x128xf32>
    %c0_2 = arith.constant 0 : index
    %c0_3 = arith.constant 0 : index
    %2 = vector.load %arg3[%c0_2, %c0_3] : memref<128x384xf32, #tpu.memory_space<vmem>>, vector<128x384xf32>
    %cst = arith.constant dense<0.000000e+00> : vector<8x384xf32>
    %3 = tpu.matmul %1, %2, %cst {dimension_numbers = #tpu.dot_dimension_numbers<[1], [0], [0], [1], [0, 0, 1, 1], [], []>} : vector<8x128xf32>, vector<128x384xf32>, vector<8x384xf32> -> vector<8x384xf32>
    %c0_4 = arith.constant 0 : index
    %c0_5 = arith.constant 0 : index
    %4 = vector.load %arg4[%c0_4, %c0_5] : memref<1x384xf32, #tpu.memory_space<vmem>>, vector<1x384xf32>
    %5 = vector.broadcast %4 : vector<1x384xf32> to vector<8x384xf32>
    %6 = arith.addf %3, %5 : vector<8x384xf32>
    %c0_6 = arith.constant 0 : index
    %c0_7 = arith.constant 0 : index
    %c0_8 = arith.constant 0 : index
    %7 = vector.load %arg5[%c0_6, %c0_7, %c0_8] : memref<1x8x384xf32, #tpu.memory_space<vmem>>, vector<1x8x384xf32>
    %8 = vector.shape_cast %7 : vector<1x8x384xf32> to vector<8x384xf32>
    %9 = vector.shape_cast %6 : vector<8x384xf32> to vector<1x8x384xf32>
    tpu.vector_store %arg5[%c0_6, %c0_7, %c0_8], %9 {strides = array<i32>} : memref<1x8x384xf32, #tpu.memory_space<vmem>>, vector<1x8x384xf32>,
    return
  }
  func.func @transform_0(%arg0: i32, %arg1: i32) -> (i32, i32, i32) {
    %c0_i32 = arith.constant 0 : i32
    %c0_i32_0 = arith.constant 0 : i32
    return %arg0, %arg1, %c0_i32 : i32, i32, i32
  }
  func.func @transform_1(%arg0: i32, %arg1: i32) -> (i32, i32) {
    %c0_i32 = arith.constant 0 : i32
    %c0_i32_0 = arith.constant 0 : i32
    %c0_i32_1 = arith.constant 0 : i32
    return %c0_i32, %c0_i32_0 : i32, i32
  }
  func.func @transform_2(%arg0: i32, %arg1: i32) -> (i32, i32) {
    %c0_i32 = arith.constant 0 : i32
    %c0_i32_0 = arith.constant 0 : i32
    %c0_i32_1 = arith.constant 0 : i32
    return %c0_i32, %c0_i32_0 : i32, i32
  }
  func.func @transform_3(%arg0: i32, %arg1: i32) -> (i32, i32, i32) {
    %c0_i32 = arith.constant 0 : i32
    %c0_i32_0 = arith.constant 0 : i32
    return %arg0, %arg1, %c0_i32 : i32, i32, i32
  }
}

</mosaic_0001>

<bundles_post_ra>
// kernel: tpu_custom_call.1
= control target key start
LH: loop header
LB: loop body
LE: loop exit
PB: predicated region body
PF: predicated region fallthrough
CT: control target
= control target key end

     0   :  { %8 = vsyncpa [#allocation3], 0  ;;  %s1237_s0 = inlined_call_operand.hbm [shape: f32[2,8,128], index: 0, kind: input, shape index: {}]   ;;  %s1238_s1 = inlined_call_operand.hbm [shape: f32[128,384], index: 1, kind: input, shape index: {}]   ;;  %s1239_s2 = inlined_call_operand.hbm [shape: f32[1,384], index: 2, kind: input, shape index: {}]   ;;  %s1240_s3 = inlined_call_operand.hbm [shape: f32[2,8,384], index: 3, kind: output, shape index: {}]  }
   0x1   :  { %10 = vsyncpa [#allocation3 + $0x1], 0 }
   0x2   :  { %11 = vsyncpa [#allocation6], 0 }
   0x3   :  { %12 = vsyncpa [#allocation4], 0 }
   0x4   :  { %14 = vsyncpa [#allocation4 + $0x1], 0  ;;  %s974_s12 = smov 0   ;;  %s976_s13 = smov 0  }
   0x5   :  { %s978_s14 = smov 0   ;;  %s980_s15 = smov 0  }
   0x6   :  { %s982_s16 = smov 0   ;;  %s984_s17 = smov 0  }
   0x7 LB: > { %s558_s18 = sadd.s32 4294967295, %s943_s17   ;;  %s559_s19 = sadd.s32 4294967294, %s943_s17   ;;  %s943_s17 = sphi %s984_s17, %s20_s17   ;;  %s939_s16 = sphi %s982_s16, %s1262_s16   ;;  %s935_s15 = sphi %s980_s15, %s1261_s15   ;;  %s931_s14 = sphi %s978_s14, %s1260_s14   ;;  %s927_s13 = sphi %s976_s13, %s1259_s13   ;;  %s923_s12 = sphi %s974_s12, %s1258_s12  }
   0x8   : > { %p54_p0 = scmp.ne.s32.totalorder %s927_s13, %s923_s12  ;;  %p1008_p1 = scmp.eq.s32.totalorder %s558_s18, 0 }
   0x9   : > { %p1012_p2 = scmp.eq.s32.totalorder %s558_s18, 1  ;;  %p128_p3 = scmp.eq.s32.totalorder %s559_s19, 1 }
   0xa   : > { %s1245_s20 = scalar_select %p1008_p1, 1, 0 }
   0xb   : > { %p1018_p4 = por %p1008_p1, %p54_p0  ;;  %p560_p5 = scmp.ge.s32.totalorder %s943_s17, 1 }
   0xc   : > { %p1023_p6 = por %p128_p3, %p54_p0  ;;  %p135_p7 = scmp.lt.s32.totalorder %s943_s17, 3 }
   0xd   : > { %s1247_s22 = scalar_select %p1018_p4, 1, 0 }
   0xe   : > { %s1248_s23 = scalar_select %p1023_p6, 1, 0 }
   0xf   : > { %p1028_p8 = pnand %p560_p5, %p135_p7  ;;  %s945_s25 = smov [#allocation5]  }
  0x10   : > { %s147_s26 = sshll.u32 %s945_s25, 4  ;;  %s946_s28 = smov [#allocation7]   ;;  %s1032_s26 = int_to_ptr.vmem [resolvable:$true] %s147_s26 }
  0x11   : > { %p695_p9 = pneg %p1028_p8  ;;  %s161_s29 = sshll.u32 %s946_s28, 4  ;;  %s1043_s29 = int_to_ptr.vmem [resolvable:$true] %s161_s29 }
  0x12   : > { %s771_s5 = scalar_lea.hbm %s1238_s1, 6144 }
  0x13   : > { %p1039_p11 = pnand %p695_p9, %p1008_p1  ;;  %p772_p12 = scmp.ne.s32.totalorder %s1238_s1, %s771_s5 }
  0x14   : > { %p778_p5 = scmp.lt.u32.totalorder %s771_s5, %s1238_s1 }
  0x15   : > { %p773_p13 = pneg %p1039_p11 }
  0x17   : > { %p774_p0 = pnand %p773_p13, %p772_p12 }
  0x19   : > { %p775_p3 = pneg %p774_p0 }
  0x1b   : > { %p780_p7 = pnand %p778_p5, %p775_p3 }
  0x1d   : > { %783 = shalt.err (!%p780_p7)
}
  0x1e   : > { %s784_s10 = scalar_lea.vmem %s1032_s26, 6144  ;;  %p792_p1 = scmp.lt.s32.totalorder %s1032_s26, %s1032_s26 }
  0x1f   : > { %p785_p9 = scmp.ne.s32.totalorder %s1032_s26, %s784_s10  ;;  %p793_p12 = scmp.lt.s32.totalorder %s784_s10, %s784_s10 }
  0x21   : > { %p787_p10 = pnand %p785_p9, %p773_p13  ;;  %p794_p0 = por %p793_p12, %p792_p1 }
  0x23   : > { %p788_p6 = pneg %p787_p10 }
  0x25   : > { %p795_p4 = pnand %p794_p0, %p788_p6 }
  0x27   : > { %798 = shalt.err (!%p795_p4)
}
  0x28   : > { %s947_s11 = smov 384   ;;  %s948_s18 = smov 24  }
  0x29   : > { %698 = dma.hbm_to_vmem [thread:$0]  (!%p1039_p11), %s1238_s1, 6144, %s1032_s26, [#allocation6], %s947_s11, %s947_s11, %s948_s18  }
  0x2a   : > { %s799_s4 = scalar_lea.hbm %s1239_s2, 48 }
  0x2b   : > { %p800_p1 = scmp.ne.s32.totalorder %s1239_s2, %s799_s4  ;;  %p806_p10 = scmp.lt.u32.totalorder %s799_s4, %s1239_s2 }
  0x2d   : > { %p802_p4 = pnand %p800_p1, %p773_p13 }
  0x2f   : > { %p803_p6 = pneg %p802_p4 }
  0x31   : > { %p808_p3 = pnand %p806_p10, %p803_p6 }
  0x33   : > { %811 = shalt.err (!%p808_p3)
}
  0x34   : > { %s812_s26 = scalar_lea.vmem %s1043_s29, 48  ;;  %s819_s9 = scalar_lea.vmem %s1043_s29, 64 }
  0x35   : > { %p813_p5 = scmp.ne.s32.totalorder %s1043_s29, %s812_s26  ;;  %p820_p12 = scmp.lt.s32.totalorder %s1043_s29, %s1043_s29 }
  0x36   : > { %p821_p0 = scmp.lt.s32.totalorder %s819_s9, %s812_s26 }
  0x37   : > { %p815_p7 = pnand %p813_p5, %p773_p13 }
  0x38   : > { %p822_p1 = por %p821_p0, %p820_p12 }
  0x39   : > { %p816_p9 = pneg %p815_p7 }
  0x3b   : > { %p823_p4 = pnand %p822_p1, %p816_p9 }
  0x3d   : > { %826 = shalt.err (!%p823_p4)
}
  0x3e   : > { %701 = dma.hbm_to_vmem [thread:$0]  (!%p1039_p11), %s1239_s2, 48, %s1043_s29, [#allocation6]  }
  0x3f   : > { %s32_s18 = sadd.s32 1, %s939_s16  ;;  %s41_s19 = sadd.s32 1, %s931_s14 }
  0x40   : > { %p34_p13 = scmp.ge.s32.totalorder %s32_s18, 2  ;;  %p48_p6 = scmp.ne.s32.totalorder %s931_s14, %s927_s13 }
  0x41   : > { %p49_p10 = scmp.eq.s32.totalorder %s943_s17, 0  ;;  %p712_p3 = scmp.lt.s32.totalorder %s943_s17, 2 }
  0x42   : > { %s1264_s18 = smov (%p34_p13, %s32_s18), 0  ;;  %p1108_p7 = por %p1012_p2, %p48_p6 }
  0x43   : > { %p50_p5 = por %p49_p10, %p48_p6  ;;  %s36_s25 = ssub.s32 %s939_s16, %s1264_s18 }
  0x44   : > { %s1251_s27 = scalar_select %p1108_p7, 1, 0 }
  0x45   : > { %s172_s28 = sand.u32 1, %s931_s14   ;;  %p39_p9 = scmp.eq.s32.totalorder %s36_s25, 0 }
  0x46   : > { %s564_s29 = sshll.u32 %s172_s28, 3  ;;  %s565_s30 = sshll.u32 %s939_s16, 7 }
  0x47   : > { %s1117_s4 = scalar_select %p39_p9, %s931_s14, %s41_s19  }
  0x48   : > { %s1122_s7 = scalar_lea.hbm %s1237_s0, %s565_s30  ;;  %s176_s21 = scalar_lea.vmem [#allocation2], %s564_s29 }
  0x49   : > { %s184_s8 = sshll.u32 %s176_s21, 4  ;;  %p1126_p2 = pnand %p712_p3, %p50_p5  ;;  %s1130_s8 = int_to_ptr.vmem [resolvable:$true] %s184_s8 }
  0x4a   : > { %s173_s9 = scalar_lea.sflag [#allocation3], %s172_s28  ;;  %s827_s10 = scalar_lea.hbm %s1122_s7, 128 }
  0x4b   : > { %p828_p11 = scmp.ne.s32.totalorder %s1122_s7, %s827_s10  ;;  %p829_p12 = pneg %p1126_p2 }
  0x4c   : > { %s832_s25 = scalar_lea.hbm %s1237_s0, 256  ;;  %p833_p4 = scmp.lt.u32.totalorder %s1122_s7, %s1237_s0 }
  0x4d   : > { %p830_p0 = pnand %p829_p12, %p828_p11  ;;  %p834_p13 = scmp.lt.u32.totalorder %s832_s25, %s827_s10 }
  0x4e   : > { %p836_p10 = scmp.lt.u32.totalorder %s827_s10, %s1122_s7 }
  0x4f   : > { %p831_p1 = pneg %p830_p0  ;;  %p835_p6 = por %p834_p13, %p833_p4 }
  0x51   : > { %p837_p3 = por %p836_p10, %p835_p6 }
  0x53   : > { %p838_p5 = pnand %p837_p3, %p831_p1 }
  0x55   : > { %841 = shalt.err (!%p838_p5)
}
  0x56   : > { %s842_s28 = scalar_lea.vmem %s1130_s8, 128  ;;  %s949_s5 = smov [#allocation2]  }
  0x57   : > { %p843_p9 = scmp.ne.s32.totalorder %s1130_s8, %s842_s28  ;;  %s847_s6 = sshll.u32 %s949_s5, 4  ;;  %s848_s6 = int_to_ptr.vmem [resolvable:$false] %s847_s6 }
  0x58   : > { %s849_s21 = scalar_lea.vmem %s848_s6, 256  ;;  %p850_p7 = scmp.lt.s32.totalorder %s1130_s8, %s848_s6 }
  0x59   : > { %p845_p11 = pnand %p843_p9, %p829_p12  ;;  %p851_p4 = scmp.lt.s32.totalorder %s849_s21, %s842_s28 }
  0x5b   : > { %p846_p0 = pneg %p845_p11  ;;  %p852_p13 = por %p851_p4, %p850_p7 }
  0x5d   : > { %p853_p6 = pnand %p852_p13, %p846_p0 }
  0x5f   : > { %856 = shalt.err (!%p853_p6)
}
  0x60   : > { %705 = dma.hbm_to_vmem [thread:$0]  (!%p1126_p2), %s1122_s7, 128, %s1130_s8, %s173_s9  }
  0x61   : > { %193 = sbr.rel (%p1028_p8) target bundleno = 373 (0x175), region = 32  ;;  %s1160_s10 = sand.u32 (!%p1028_p8), 1, %s927_s13  }
  0x62   : > { %s567_s11 = sshll.u32 (!%p1028_p8), %s1160_s10, 3  ;;  %s196_s19 = scalar_lea.sflag (!%p1028_p8), [#allocation3], %s1160_s10 }
  0x63   : > { %s1164_s25 = scalar_lea.vmem (!%p1028_p8), [#allocation2], %s567_s11  ;;  %p1253_p7 = scmp.ne.s32.totalorder (!%p1028_p8), %s1247_s22, 0 }
  0x68   : > { %910 = dma.done.wait (%p1253_p7), %s196_s19, 128  }
  0x69   : > { %912 = vsyncadd (%p1253_p7), %s196_s19, 4294967168  ;;  %p1254_p2 = scmp.ne.s32.totalorder %s1245_s20, 0 }
  0x6b   : > { %914 = dma.done.wait (%p1254_p2), [#allocation6], 6192  }
  0x6c   : > { %916 = vsyncadd (%p1254_p2), [#allocation6], 4294961104  ;;  %v950_v0 = vmov 0.0|0.0   ;;  %v951_v1 = vmov 0.0   ;;  %vm952_vm0 = vmmov 0   ;;  %v232_v2 = vld [vmem:[#allocation5 + $0x8] sm:$0xff] }
  0x6d   : > { %657 = vmatprep.subr.bf16.mxu1 %v950_v0  ;;  %360 = vmatprep.mubr.f32.mxu0 %v951_v1  ;;  %v235_v3 = vld [vmem:[#allocation5 + $0x20] sm:$0xff]  ;;  %v234_v6 = vld [vmem:[#allocation5 + $0x18] sm:$0xff]  ;;  %v233_v7 = vld [vmem:[#allocation5 + $0x10] sm:$0xff]  ;;  %s681_s20 = smul.u32 24, %s1160_s10  ;;  %p1255_p12 = scmp.ne.s32.totalorder %s1251_s27, 0 }
  0x6e   : > { %622 = vmatprep.mubr.msk.f32.mxu1 %vm952_vm0, %v951_v1  ;;  %v231_v4 = vld [vmem:[#allocation5] sm:$0xff]  ;;  %v625_v5 = vpack.c.bf16 %v235_v3, %v232_v2  ;;  %v236_v8 = vld [vmem:[#allocation5 + $0x28] sm:$0xff]  ;;  %v238_v11 = vld [vmem:[#allocation5 + $0x38] sm:$0xff]  ;;  %s682_s22 = smul.u32 384, %s935_s15  ;;  %s441_s15 = scalar_lea.sflag [#allocation4], %s1160_s10 }
  0x6f   : > { %v627_v9 = vpack.c.bf16 %v234_v6, %v231_v4  ;;  %v658_v10 = vpack.c.bf16 %v236_v8, %v233_v7  ;;  %v241_v12 = vld [vmem:[#allocation5 + $0x50] sm:$0xff]  ;;  %v240_v15 = vld [vmem:[#allocation5 + $0x48] sm:$0xff]  ;;  %v239_v16 = vld [vmem:[#allocation5 + $0x40] sm:$0xff]  ;;  %s229_s24 = scalar_lea.vmem [#allocation8], %s681_s20  ;;  %s953_s30 = smov [#allocation8]  }
  0x70   : > { %v237_v13 = vld [vmem:[#allocation5 + $0x30] sm:$0xff]  ;;  %626 = vmatprep.subr.bf16.mxu0 %v625_v5  ;;  %v629_v14 = vpack.c.bf16 %v241_v12, %v238_v11  ;;  %v242_v17 = vld [vmem:[#allocation5 + $0x58] sm:$0xff]  ;;  %v244_v20 = vld [vmem:[#allocation5 + $0x68] sm:$0xff]  ;;  %v281_v12 = vlaneseq  ;;  %s457_s7 = sshll.u32 %s229_s24, 4  ;;  %s1188_s9 = scalar_lea.hbm %s1240_s3, %s682_s22  ;;  %s1190_s7 = int_to_ptr.vmem [resolvable:$true] %s457_s7 }
  0x71   : > { %628 = vmatpush1.bf16.msra.mxu0 %v627_v9  ;;  %659 = vmatpush3.bf16.msra.mxu1 %v658_v10  ;;  %v631_v18 = vpack.c.bf16 %v240_v15, %v237_v13  ;;  %v661_v19 = vpack.c.bf16 %v242_v17, %v239_v16  ;;  %v247_v21 = vld [vmem:[#allocation5 + $0x80] sm:$0xff]  ;;  %v246_v24 = vld [vmem:[#allocation5 + $0x78] sm:$0xff]  ;;  %v245_v25 = vld [vmem:[#allocation5 + $0x70] sm:$0xff]  ;;  %s857_s29 = scalar_lea.vmem %s1190_s7, 384  ;;  %s861_s28 = sshll.u32 %s953_s30, 4  ;;  %s862_s28 = int_to_ptr.vmem [resolvable:$false] %s861_s28 }
  0x72   : > { %v243_v22 = vld [vmem:[#allocation5 + $0x60] sm:$0xff]  ;;  %630 = vmatprep.subr.bf16.mxu0 %v629_v14  ;;  %660 = vmatprep.subr.bf16.mxu1 %v950_v0  ;;  %v633_v23 = vpack.c.bf16 %v247_v21, %v244_v20  ;;  %v248_v26 = vld [vmem:[#allocation5 + $0x88] sm:$0xff]  ;;  %v250_v27 = vld [vmem:[#allocation5 + $0x98] sm:$0xff]  ;;  %v282_v13 = vshrl.u32 %v281_v12, 7  ;;  %p858_p8 = scmp.ne.s32.totalorder %s1190_s7, %s857_s29  ;;  %s863_s5 = scalar_lea.vmem %s862_s28, 768 }
  0x73   : > { %v253_v28 = vld [vmem:[#allocation5 + $0xb0] sm:$0xff]  ;;  %v635_v29 = vpack.c.bf16 %v246_v24, %v243_v22  ;;  %v664_v30 = vpack.c.bf16 %v248_v26, %v245_v25  ;;  %v252_v33 = vld [vmem:[#allocation5 + $0xa8] sm:$0xff]  ;;  %v251_v34 = vld [vmem:[#allocation5 + $0xa0] sm:$0xff]  ;;  %p864_p3 = scmp.lt.s32.totalorder %s1190_s7, %s862_s28  ;;  %p865_p5 = scmp.lt.s32.totalorder %s863_s5, %s857_s29 }
  0x74   : > { %v249_v31 = vld [vmem:[#allocation5 + $0x90] sm:$0xff]  ;;  %v637_v32 = vpack.c.bf16 %v253_v28, %v250_v27  ;;  %v254_v35 = vld [vmem:[#allocation5 + $0xb8] sm:$0xff]  ;;  %v256_v36 = vld [vmem:[#allocation5 + $0xc8] sm:$0xff]  ;;  %v283_v14 = vsub.s32 0, %v282_v13  ;;  %v291_v15 = vsub.s32 2, %v282_v13  ;;  %v287_v17 = vsub.s32 1, %v282_v13  ;;  %p859_p1 = pnand %p858_p8, %p1255_p12 }
  0x75   : > { %632 = vmatpush1.bf16.msra.mxu0 %v631_v18  ;;  %662 = vmatpush3.bf16.msra.mxu1 %v661_v19  ;;  %v259_v37 = vld [vmem:[#allocation5 + $0xe0] sm:$0xff]  ;;  %v639_v38 = vpack.c.bf16 %v252_v33, %v249_v31  ;;  %v667_v39 = vpack.c.bf16 %v254_v35, %v251_v34  ;;  %v258_v42 = vld [vmem:[#allocation5 + $0xd8] sm:$0xff]  ;;  %v257_v43 = vld [vmem:[#allocation5 + $0xd0] sm:$0xff]  ;;  %p866_p9 = por %p865_p5, %p864_p3 }
  0x76   : > { %634 = vmatprep.subr.bf16.mxu0 %v633_v23  ;;  %663 = vmatprep.subr.bf16.mxu1 %v950_v0  ;;  %v255_v40 = vld [vmem:[#allocation5 + $0xc0] sm:$0xff]  ;;  %v641_v41 = vpack.c.bf16 %v259_v37, %v256_v36  ;;  %v260_v44 = vld [vmem:[#allocation5 + $0xe8] sm:$0xff]  ;;  %v262_v45 = vld [vmem:[#allocation5 + $0xf8] sm:$0xff]  ;;  %p860_p10 = pneg %p859_p1 }
  0x77   : > { %v265_v46 = vld [vmem:[#allocation5 + $0x110] sm:$0xff]  ;;  %v643_v47 = vpack.c.bf16 %v258_v42, %v255_v40  ;;  %v670_v48 = vpack.c.bf16 %v260_v44, %v257_v43  ;;  %v264_v51 = vld [vmem:[#allocation5 + $0x108] sm:$0xff]  ;;  %v263_v52 = vld [vmem:[#allocation5 + $0x100] sm:$0xff] }
  0x78   : > { %v261_v49 = vld [vmem:[#allocation5 + $0xf0] sm:$0xff]  ;;  %v645_v50 = vpack.c.bf16 %v265_v46, %v262_v45  ;;  %v266_v53 = vld [vmem:[#allocation5 + $0x118] sm:$0xff]  ;;  %v268_v54 = vld [vmem:[#allocation5 + $0x128] sm:$0xff]  ;;  %p867_p11 = pnand %p866_p9, %p860_p10 }
  0x79   : > { %636 = vmatpush1.bf16.msra.mxu0 %v635_v29  ;;  %665 = vmatpush3.bf16.msra.mxu1 %v664_v30  ;;  %v271_v55 = vld [vmem:[#allocation5 + $0x140] sm:$0xff]  ;;  %v647_v56 = vpack.c.bf16 %v264_v51, %v261_v49  ;;  %v673_v57 = vpack.c.bf16 %v266_v53, %v263_v52  ;;  %v270_v60 = vld [vmem:[#allocation5 + $0x138] sm:$0xff]  ;;  %v269_v61 = vld [vmem:[#allocation5 + $0x130] sm:$0xff] }
  0x7a   : > { %638 = vmatprep.subr.bf16.mxu0 %v637_v32  ;;  %666 = vmatprep.subr.bf16.mxu1 %v950_v0  ;;  %v267_v58 = vld [vmem:[#allocation5 + $0x120] sm:$0xff]  ;;  %v649_v59 = vpack.c.bf16 %v271_v55, %v268_v54  ;;  %v272_v62 = vld [vmem:[#allocation5 + $0x148] sm:$0xff]  ;;  %v274_v63 = vld [vmem:[#allocation5 + $0x158] sm:$0xff] }
  0x7b   : > { %v277_v1 = vld [vmem:[#allocation5 + $0x170] sm:$0xff]  ;;  %v651_v2 = vpack.c.bf16 %v270_v60, %v267_v58  ;;  %v676_v3 = vpack.c.bf16 %v272_v62, %v269_v61  ;;  %v276_v6 = vld [vmem:[#allocation5 + $0x168] sm:$0xff]  ;;  %v275_v7 = vld [vmem:[#allocation5 + $0x160] sm:$0xff] }
  0x7c   : > { %v273_v4 = vld [vmem:[#allocation5 + $0x150] sm:$0xff]  ;;  %v653_v5 = vpack.c.bf16 %v277_v1, %v274_v63  ;;  %v278_v8 = vld [vmem:[#allocation5 + $0x178] sm:$0xff]  ;;  %v279_v16 = vld [vmem:[#allocation7] sm:$0x7] }
  0x7d   : > { %640 = vmatpush1.bf16.msra.mxu0 %v639_v38  ;;  %668 = vmatpush3.bf16.msra.mxu1 %v667_v39  ;;  %v655_v9 = vpack.c.bf16 %v276_v6, %v273_v4  ;;  %v679_v10 = vpack.c.bf16 %v278_v8, %v275_v7  ;;  %v230_v11 = vld [vmem:[%s1164_s25] sm:$0xff]  ;;  %v284_v18 = vrot.slane %v279_v16, %v283_v14 }
  0x7e   : > { %642 = vmatprep.subr.bf16.mxu0 %v641_v41  ;;  %669 = vmatprep.subr.bf16.mxu1 %v950_v0  ;;  %v292_v19 = vrot.slane %v279_v16, %v291_v15  ;;  %v288_v20 = vrot.slane %v279_v16, %v287_v17 }
  0x81   : > { %644 = vmatpush1.bf16.msra.mxu0 %v643_v47  ;;  %671 = vmatpush3.bf16.msra.mxu1 %v670_v48 }
  0x82   : > { %646 = vmatprep.subr.bf16.mxu0 %v645_v50  ;;  %672 = vmatprep.subr.bf16.mxu1 %v950_v0 }
  0x85   : > { %648 = vmatpush1.bf16.msra.mxu0 %v647_v56  ;;  %674 = vmatpush3.bf16.msra.mxu1 %v673_v57 }
  0x86   : > { %650 = vmatprep.subr.bf16.mxu0 %v649_v59  ;;  %675 = vmatprep.subr.bf16.mxu1 %v950_v0 }
  0x89   : > { %652 = vmatpush1.bf16.msra.mxu0 %v651_v2  ;;  %677 = vmatpush3.bf16.msra.mxu1 %v676_v3 }
  0x8a   : > { %654 = vmatprep.subr.bf16.mxu0 %v653_v5  ;;  %678 = vmatprep.subr.bf16.mxu1 %v950_v0 }
  0x8d   : > { %656 = vmatpush1.bf16.msra.mxu0 %v655_v9  ;;  %680 = vmatpush3.bf16.msra.mxu1 %v679_v10 }
  0x90   : > { %361 = vmatmul.mubr.f32.vlgmr.msra.gmra.mrb[0].mxu0 %v230_v11  ;;  %623 = vmatmul.mubr.f32.vlgmr.msra.gmra.mrb[0].mxu1 %v230_v11 }
 0x163   : > { %v362_v0 = vpop.f32.mrb[0].mxu0  ;;  %v433_v21 = vpop.f32.mrb[0].mxu1 }
 0x164   : > { %v363_v22 = vadd.f32 %v362_v0, %v284_v18  ;;  %v434_v23 = vadd.f32 %v433_v21, %v292_v19  ;;  %v364_v24 = vpop.f32.mrb[1].mxu0  ;;  %v624_v25 = vpop.f32.mrb[1].mxu1 }
 0x165   : > { %v365_v26 = vadd.f32 %v364_v24, %v288_v20 }
 0x166   : > { %437 = vst [vmem:[%s229_s24] sm:$0xff] %v363_v22  ;;  %439 = vst [vmem:[%s229_s24 + $0x10] sm:$0xff] %v434_v23 }
 0x167   : > { %438 = vst [vmem:[%s229_s24 + $0x8] sm:$0xff] %v365_v26 }
 0x168   : > { %870 = shalt.err (!%p867_p11)
}
 0x169   : > { %s871_s6 = scalar_lea.hbm %s1188_s9, 384  ;;  %s875_s11 = scalar_lea.hbm %s1240_s3, 768 }
 0x16a   : > { %p872_p0 = scmp.ne.s32.totalorder %s1188_s9, %s871_s6  ;;  %p876_p6 = scmp.lt.u32.totalorder %s1188_s9, %s1240_s3 }
 0x16b   : > { %p877_p7 = scmp.lt.u32.totalorder %s875_s11, %s871_s6  ;;  %p879_p8 = scmp.lt.u32.totalorder %s871_s6, %s1188_s9 }
 0x16c   : > { %p873_p4 = pnand %p872_p0, %p1255_p12 }
 0x16d   : > { %p878_p2 = por %p877_p7, %p876_p6 }
 0x16e   : > { %p874_p13 = pneg %p873_p4 }
 0x16f   : > { %p880_p1 = por %p879_p8, %p878_p2 }
 0x171   : > { %p881_p10 = pnand %p880_p1, %p874_p13 }
 0x173   : > { %884 = shalt.err (!%p881_p10)
}
 0x174   : > { %693 = dma.vmem_to_hbm [thread:$0]  (%p1255_p12), %s1190_s7, 384, %s1188_s9, %s441_s15  }
 0x175 PF: > { %s469_s20 = sand.u32 1, %s923_s12   ;;  %p1256_p3 = scmp.ne.s32.totalorder %s1248_s23, 0 }
 0x176   : > { %p1257_p5 = scmp.ge.s32.totalorder %s943_s17, 2  ;;  %s470_s22 = scalar_lea.sflag [#allocation4], %s469_s20 }
 0x178   : > { %p707_p9 = pnand %p1257_p5, %p1256_p3 }
 0x17a   : > { %918 = dma.done.wait (!%p707_p9), %s470_s22, 384  }
 0x17b   : > { %920 = vsyncadd (!%p707_p9), %s470_s22, 4294966912  ;;  %s20_s17 = sadd.s32 1, %s943_s17   ;;  %s1258_s12 = smov %s927_s13 }
 0x17c   : > { %p17_p11 = scmp.ge.s32.totalorder %s20_s17, 4   ;;  %s1259_s13 = smov %s931_s14 }
 0x17d   : > { %s1260_s14 = smov %s1117_s4  ;;  %s1261_s15 = smov %s939_s16 }
 0x17e   : > { %s1262_s16 = smov %s1264_s18  ;;  %19 = sbr.rel (!%p17_p11) target bundleno = 7 (0x7), region = 85 }
 0x185   :  { %475 = vsyncpa [#allocation3], 1 }
 0x186   :  { %477 = vsyncpa [#allocation3 + $0x1], 1 }
 0x187   :  { %478 = vsyncpa [#allocation6], 1 }
 0x188   :  { %479 = vsyncpa [#allocation4], 1 }
 0x189   :  { %481 = vsyncpa [#allocation4 + $0x1], 1 }

</bundles_post_ra>
